<compile_context>
chip_gen: v7x
topology: tpu7x:2x2x1
jax: 0.10.0
libtpu: 0.0.40
codegen_flags: <defaults>
</compile_context>

<pallas_src>
import jax
import jax.numpy as jnp
from jax.experimental import pallas as pl
from jax.experimental.pallas import tpu as pltpu


def _round_up(x, m):
    return ((x + m - 1) // m) * m


def _pinn_kernel(x_ref,
                 w_in_ref, b_in_ref,
                 w1_ref, b1_ref,
                 w2_ref, b2_ref,
                 w3_ref, b3_ref,
                 w_out_ref, b_out_ref,
                 o_ref):
    """Whole MLP for one batch tile, fused in a single kernel body."""
    cdt = w1_ref.dtype  # MXU compute dtype (bf16 by default, or f32)

    def dense(h, w_ref, b_ref):
        # MXU matmul with f32 accumulation; bias-add stays in f32.
        return jnp.dot(h, w_ref[...], preferred_element_type=jnp.float32) + b_ref[...]

    x = x_ref[...].astype(cdt)
    h = jnp.tanh(dense(x, w_in_ref, b_in_ref)).astype(cdt)   # (tm, 64)
    h = jnp.tanh(dense(h, w1_ref, b1_ref)).astype(cdt)       # (tm, 256)
    # fc2 applied twice with the same weights, as in the PyTorch forward.
    # TODO(synk): if profiling shows MXU-push-bound, keep w2 resident across both
    # uses via pltpu.matmul_push_rhs / matmul_acc_lhs / matmul_pop.
    h = jnp.tanh(dense(h, w2_ref, b2_ref)).astype(cdt)       # (tm, 256)
    h = jnp.tanh(dense(h, w2_ref, b2_ref)).astype(cdt)       # (tm, 256)
    h = jnp.tanh(dense(h, w3_ref, b3_ref)).astype(cdt)       # (tm, 64)
    out = dense(h, w_out_ref, b_out_ref)                     # (tm, 128-padded), no activation
    o_ref[...] = out.astype(o_ref.dtype)


_PARAM_ORDER = ("w_in", "b_in", "w1", "b1", "w2", "b2", "w3", "b3", "w_out", "b_out")


def pinn_forward(x, params, *, block_m=512, matmul_dtype=jnp.bfloat16):
    """x: (batch, input_dim) f32. params: dict of (in,out) weights + (1,out) biases."""
    batch, input_dim = x.shape
    output_dim = params["w_out"].shape[1]

    # ---- batch tiling: big tiles, but keep >= 2 grid steps so v7x's 2 TCs both work ----
    block_m = max(8, _round_up(block_m, 8))
    bm = min(block_m, _round_up(batch, 8))
    if _round_up(batch, bm) // bm < 2 and batch >= 16:
        bm = _round_up((batch + 1) // 2, 8)
    padded_batch = _round_up(batch, bm)
    grid = (padded_batch // bm,)

    if padded_batch != batch:
        x = jnp.pad(x, ((0, padded_batch - batch), (0, 0)))

    # ---- lane-dense output: zero-pad the last layer to a multiple of 128 lanes ----
    out_pad = _round_up(output_dim, 128)
    w_out, b_out = params["w_out"], params["b_out"]
    if out_pad != output_dim:
        w_out = jnp.pad(w_out, ((0, 0), (0, out_pad - output_dim)))
        b_out = jnp.pad(b_out, ((0, 0), (0, out_pad - output_dim)))

    # Weights feed the MXU -> cast to matmul dtype (bf16 on v6e/v7x).
    # Biases stay f32 so bias-add / tanh run in f32.
    kernel_params = dict(params, w_out=w_out, b_out=b_out)
    kernel_args = []
    for name in _PARAM_ORDER:
        arr = kernel_params[name]
        arr = arr.astype(matmul_dtype) if name.startswith("w") else arr.astype(jnp.float32)
        kernel_args.append(arr)

    # Replicated (grid-invariant) spec for every parameter; blocks never change
    # across the grid so they are not re-DMA'd, and at ~0.4 MiB total the
    # default double-buffer costs negligible VMEM.
    def rep_spec(arr):
        return pl.BlockSpec(arr.shape, lambda i: (0, 0))

    in_specs = [pl.BlockSpec((bm, input_dim), lambda i: (i, 0))]
    in_specs += [rep_spec(a) for a in kernel_args]
    out_spec = pl.BlockSpec((bm, out_pad), lambda i: (i, 0))

    # Conservative (f32) VMEM estimate; only raise the scoped limit when a huge
    # block_m would exceed v5e's 16 MiB default scope.
    param_bytes = sum(int(a.size) * a.dtype.itemsize for a in kernel_args)
    est_vmem = (2 * bm * (max(input_dim, 128) + out_pad) * 4   # double-buffered x / out tiles
                + 2 * param_bytes                              # double-buffered params
                + 6 * bm * 256 * 4)                            # live activations
    compiler_kwargs = dict(dimension_semantics=("parallel",))
    if est_vmem > 16 * 1024 * 1024:
        compiler_kwargs["vmem_limit_bytes"] = int(min(2 * est_vmem, 64 * 1024 * 1024))

    fn = pl.pallas_call(
        _pinn_kernel,
        out_shape=jax.ShapeDtypeStruct((padded_batch, out_pad), jnp.float32),
        grid_spec=pltpu.PrefetchScalarGridSpec(
            num_scalar_prefetch=0,
            grid=grid,
            in_specs=in_specs,
            out_specs=out_spec,
        ),
        compiler_params=pltpu.CompilerParams(**compiler_kwargs),
    )
    out = fn(x, *kernel_args)
    return out[:batch, :output_dim]


def init_params(key, input_dim, output_dim):
    """Deterministic init mimicking PyTorch nn.Linear (U[-1/sqrt(fan_in), 1/sqrt(fan_in)]).
    Weights stored transposed as (in_features, out_features) for the kernel."""
    dims = [
        ("w_in", "b_in", input_dim, 64),
        ("w1", "b1", 64, 256),
        ("w2", "b2", 256, 256),
        ("w3", "b3", 256, 64),
        ("w_out", "b_out", 64, output_dim),
    ]
    params = {}
    for wname, bname, fan_in, fan_out in dims:
        key, kw, kb = jax.random.split(key, 3)
        bound = 1.0 / jnp.sqrt(jnp.float32(fan_in))
        params[wname] = jax.random.uniform(
            kw, (fan_in, fan_out), jnp.float32, -bound, bound)
        params[bname] = jax.random.uniform(
            kb, (1, fan_out), jnp.float32, -bound, bound)
    return params


def pinn_reference(x, params):
    """Pure-JAX f32 reference for correctness check."""
    h = jnp.tanh(x @ params["w_in"] + params["b_in"])
    h = jnp.tanh(h @ params["w1"] + params["b1"])
    h = jnp.tanh(h @ params["w2"] + params["b2"])
    h = jnp.tanh(h @ params["w2"] + params["b2"])
    h = jnp.tanh(h @ params["w3"] + params["b3"])
    return h @ params["w_out"] + params["b_out"]


if __name__ == "__main__":
    key = jax.random.PRNGKey(0)
    key, kx, kp = jax.random.split(key, 3)

    batch, input_dim, output_dim = 64, 4, 3
    x = jax.random.normal(kx, (batch, input_dim), jnp.float32)
    params = init_params(kp, input_dim, output_dim)

    ref = pinn_reference(x, params)

    # f32 MXU path: bit-faithful to the PyTorch forward (tight tolerance).
    out_f32 = jax.block_until_ready(
        pinn_forward(x, params, matmul_dtype=jnp.float32))
    assert out_f32.shape == (batch, output_dim)
    assert jnp.allclose(out_f32, ref, atol=1e-5, rtol=1e-5), "f32 mismatch vs reference"

    # Default bf16-MXU path (fast on v6e/v7x): looser tolerance vs f32 reference.
    out_bf16 = jax.block_until_ready(pinn_forward(x, params))
    assert out_bf16.shape == (batch, output_dim)
    assert jnp.allclose(out_bf16, ref, atol=5e-2, rtol=5e-2), "bf16 mismatch vs reference"

    print("KERNEL_OK")
</pallas_src>

<mosaic_0001>
module attributes {stable_mosaic.version = 11 : i64} {
  func.func @_pinn_kernel(%arg0: i32, %arg1: memref<32x4xf32, #tpu.memory_space<vmem>>, %arg2: memref<4x64xf32, #tpu.memory_space<vmem>>, %arg3: memref<1x64xf32, #tpu.memory_space<vmem>>, %arg4: memref<64x256xf32, #tpu.memory_space<vmem>>, %arg5: memref<1x256xf32, #tpu.memory_space<vmem>>, %arg6: memref<256x256xf32, #tpu.memory_space<vmem>>, %arg7: memref<1x256xf32, #tpu.memory_space<vmem>>, %arg8: memref<256x64xf32, #tpu.memory_space<vmem>>, %arg9: memref<1x64xf32, #tpu.memory_space<vmem>>, %arg10: memref<64x128xf32, #tpu.memory_space<vmem>>, %arg11: memref<1x128xf32, #tpu.memory_space<vmem>>, %arg12: memref<32x128xf32, #tpu.memory_space<vmem>>) attributes {dimension_semantics = [#tpu.dimension_semantics<parallel>], iteration_bounds = array<i64: 2>, scalar_prefetch = 0 : i64, scratch_operands = 0 : i64, tpu.core_type = #tpu.core_type<tc>, window_params = [{transform_indices = @transform_0, window_bounds = array<i64: 32, 4>}, {pipeline_mode = #tpu.pipeline_mode<synchronous>, transform_indices = @transform_1, window_bounds = array<i64: 4, 64>}, {pipeline_mode = #tpu.pipeline_mode<synchronous>, transform_indices = @transform_2, window_bounds = array<i64: 1, 64>}, {pipeline_mode = #tpu.pipeline_mode<synchronous>, transform_indices = @transform_3, window_bounds = array<i64: 64, 256>}, {pipeline_mode = #tpu.pipeline_mode<synchronous>, transform_indices = @transform_4, window_bounds = array<i64: 1, 256>}, {pipeline_mode = #tpu.pipeline_mode<synchronous>, transform_indices = @transform_5, window_bounds = array<i64: 256, 256>}, {pipeline_mode = #tpu.pipeline_mode<synchronous>, transform_indices = @transform_6, window_bounds = array<i64: 1, 256>}, {pipeline_mode = #tpu.pipeline_mode<synchronous>, transform_indices = @transform_7, window_bounds = array<i64: 256, 64>}, {pipeline_mode = #tpu.pipeline_mode<synchronous>, transform_indices = @transform_8, window_bounds = array<i64: 1, 64>}, {pipeline_mode = #tpu.pipeline_mode<synchronous>, transform_indices = @transform_9, window_bounds = array<i64: 64, 128>}, {pipeline_mode = #tpu.pipeline_mode<synchronous>, transform_indices = @transform_10, window_bounds = array<i64: 1, 128>}, {transform_indices = @transform_11, window_bounds = array<i64: 32, 128>}]} {
    %c0 = arith.constant 0 : index
    %c0_0 = arith.constant 0 : index
    %0 = vector.load %arg1[%c0, %c0_0] : memref<32x4xf32, #tpu.memory_space<vmem>>, vector<32x4xf32>
    %c0_1 = arith.constant 0 : index
    %c0_2 = arith.constant 0 : index
    %1 = vector.load %arg2[%c0_1, %c0_2] : memref<4x64xf32, #tpu.memory_space<vmem>>, vector<4x64xf32>
    %cst = arith.constant dense<0.000000e+00> : vector<32x64xf32>
    %2 = tpu.matmul %0, %1, %cst {dimension_numbers = #tpu.dot_dimension_numbers<[1], [0], [0], [1], [0, 0, 1, 1], [], []>} : vector<32x4xf32>, vector<4x64xf32>, vector<32x64xf32> -> vector<32x64xf32>
    %c0_3 = arith.constant 0 : index
    %c0_4 = arith.constant 0 : index
    %3 = vector.load %arg3[%c0_3, %c0_4] : memref<1x64xf32, #tpu.memory_space<vmem>>, vector<1x64xf32>
    %4 = vector.broadcast %3 : vector<1x64xf32> to vector<32x64xf32>
    %5 = arith.addf %2, %4 : vector<32x64xf32>
    %6 = math.tanh %5 : vector<32x64xf32>
    %c0_5 = arith.constant 0 : index
    %c0_6 = arith.constant 0 : index
    %7 = vector.load %arg4[%c0_5, %c0_6] : memref<64x256xf32, #tpu.memory_space<vmem>>, vector<64x256xf32>
    %cst_7 = arith.constant dense<0.000000e+00> : vector<32x256xf32>
    %8 = tpu.matmul %6, %7, %cst_7 {dimension_numbers = #tpu.dot_dimension_numbers<[1], [0], [0], [1], [0, 0, 1, 1], [], []>} : vector<32x64xf32>, vector<64x256xf32>, vector<32x256xf32> -> vector<32x256xf32>
    %c0_8 = arith.constant 0 : index
    %c0_9 = arith.constant 0 : index
    %9 = vector.load %arg5[%c0_8, %c0_9] : memref<1x256xf32, #tpu.memory_space<vmem>>, vector<1x256xf32>
    %10 = vector.broadcast %9 : vector<1x256xf32> to vector<32x256xf32>
    %11 = arith.addf %8, %10 : vector<32x256xf32>
    %12 = math.tanh %11 : vector<32x256xf32>
    %c0_10 = arith.constant 0 : index
    %c0_11 = arith.constant 0 : index
    %13 = vector.load %arg6[%c0_10, %c0_11] : memref<256x256xf32, #tpu.memory_space<vmem>>, vector<256x256xf32>
    %cst_12 = arith.constant dense<0.000000e+00> : vector<32x256xf32>
    %14 = tpu.matmul %12, %13, %cst_12 {dimension_numbers = #tpu.dot_dimension_numbers<[1], [0], [0], [1], [0, 0, 1, 1], [], []>} : vector<32x256xf32>, vector<256x256xf32>, vector<32x256xf32> -> vector<32x256xf32>
    %c0_13 = arith.constant 0 : index
    %c0_14 = arith.constant 0 : index
    %15 = vector.load %arg7[%c0_13, %c0_14] : memref<1x256xf32, #tpu.memory_space<vmem>>, vector<1x256xf32>
    %16 = vector.broadcast %15 : vector<1x256xf32> to vector<32x256xf32>
    %17 = arith.addf %14, %16 : vector<32x256xf32>
    %18 = math.tanh %17 : vector<32x256xf32>
    %c0_15 = arith.constant 0 : index
    %c0_16 = arith.constant 0 : index
    %19 = vector.load %arg6[%c0_15, %c0_16] : memref<256x256xf32, #tpu.memory_space<vmem>>, vector<256x256xf32>
    %cst_17 = arith.constant dense<0.000000e+00> : vector<32x256xf32>
    %20 = tpu.matmul %18, %19, %cst_17 {dimension_numbers = #tpu.dot_dimension_numbers<[1], [0], [0], [1], [0, 0, 1, 1], [], []>} : vector<32x256xf32>, vector<256x256xf32>, vector<32x256xf32> -> vector<32x256xf32>
    %c0_18 = arith.constant 0 : index
    %c0_19 = arith.constant 0 : index
    %21 = vector.load %arg7[%c0_18, %c0_19] : memref<1x256xf32, #tpu.memory_space<vmem>>, vector<1x256xf32>
    %22 = vector.broadcast %21 : vector<1x256xf32> to vector<32x256xf32>
    %23 = arith.addf %20, %22 : vector<32x256xf32>
    %24 = math.tanh %23 : vector<32x256xf32>
    %c0_20 = arith.constant 0 : index
    %c0_21 = arith.constant 0 : index
    %25 = vector.load %arg8[%c0_20, %c0_21] : memref<256x64xf32, #tpu.memory_space<vmem>>, vector<256x64xf32>
    %cst_22 = arith.constant dense<0.000000e+00> : vector<32x64xf32>
    %26 = tpu.matmul %24, %25, %cst_22 {dimension_numbers = #tpu.dot_dimension_numbers<[1], [0], [0], [1], [0, 0, 1, 1], [], []>} : vector<32x256xf32>, vector<256x64xf32>, vector<32x64xf32> -> vector<32x64xf32>
    %c0_23 = arith.constant 0 : index
    %c0_24 = arith.constant 0 : index
    %27 = vector.load %arg9[%c0_23, %c0_24] : memref<1x64xf32, #tpu.memory_space<vmem>>, vector<1x64xf32>
    %28 = vector.broadcast %27 : vector<1x64xf32> to vector<32x64xf32>
    %29 = arith.addf %26, %28 : vector<32x64xf32>
    %30 = math.tanh %29 : vector<32x64xf32>
    %c0_25 = arith.constant 0 : index
    %c0_26 = arith.constant 0 : index
    %31 = vector.load %arg10[%c0_25, %c0_26] : memref<64x128xf32, #tpu.memory_space<vmem>>, vector<64x128xf32>
    %cst_27 = arith.constant dense<0.000000e+00> : vector<32x128xf32>
    %32 = tpu.matmul %30, %31, %cst_27 {dimension_numbers = #tpu.dot_dimension_numbers<[1], [0], [0], [1], [0, 0, 1, 1], [], []>} : vector<32x64xf32>, vector<64x128xf32>, vector<32x128xf32> -> vector<32x128xf32>
    %c0_28 = arith.constant 0 : index
    %c0_29 = arith.constant 0 : index
    %33 = vector.load %arg11[%c0_28, %c0_29] : memref<1x128xf32, #tpu.memory_space<vmem>>, vector<1x128xf32>
    %34 = vector.broadcast %33 : vector<1x128xf32> to vector<32x128xf32>
    %35 = arith.addf %32, %34 : vector<32x128xf32>
    %c0_30 = arith.constant 0 : index
    %c0_31 = arith.constant 0 : index
    %36 = vector.load %arg12[%c0_30, %c0_31] : memref<32x128xf32, #tpu.memory_space<vmem>>, vector<32x128xf32>
    tpu.vector_store %arg12[%c0_30, %c0_31], %35 {strides = array<i32>} : memref<32x128xf32, #tpu.memory_space<vmem>>, vector<32x128xf32>,
    return
  }
  func.func @transform_0(%arg0: i32) -> (i32, i32) {
    %c0_i32 = arith.constant 0 : i32
    %c0_i32_0 = arith.constant 0 : i32
    return %arg0, %c0_i32 : i32, i32
  }
  func.func @transform_1(%arg0: i32) -> (i32, i32) {
    %c0_i32 = arith.constant 0 : i32
    %c0_i32_0 = arith.constant 0 : i32
    %c0_i32_1 = arith.constant 0 : i32
    return %c0_i32, %c0_i32_0 : i32, i32
  }
  func.func @transform_2(%arg0: i32) -> (i32, i32) {
    %c0_i32 = arith.constant 0 : i32
    %c0_i32_0 = arith.constant 0 : i32
    %c0_i32_1 = arith.constant 0 : i32
    return %c0_i32, %c0_i32_0 : i32, i32
  }
  func.func @transform_3(%arg0: i32) -> (i32, i32) {
    %c0_i32 = arith.constant 0 : i32
    %c0_i32_0 = arith.constant 0 : i32
    %c0_i32_1 = arith.constant 0 : i32
    return %c0_i32, %c0_i32_0 : i32, i32
  }
  func.func @transform_4(%arg0: i32) -> (i32, i32) {
    %c0_i32 = arith.constant 0 : i32
    %c0_i32_0 = arith.constant 0 : i32
    %c0_i32_1 = arith.constant 0 : i32
    return %c0_i32, %c0_i32_0 : i32, i32
  }
  func.func @transform_5(%arg0: i32) -> (i32, i32) {
    %c0_i32 = arith.constant 0 : i32
    %c0_i32_0 = arith.constant 0 : i32
    %c0_i32_1 = arith.constant 0 : i32
    return %c0_i32, %c0_i32_0 : i32, i32
  }
  func.func @transform_6(%arg0: i32) -> (i32, i32) {
    %c0_i32 = arith.constant 0 : i32
    %c0_i32_0 = arith.constant 0 : i32
    %c0_i32_1 = arith.constant 0 : i32
    return %c0_i32, %c0_i32_0 : i32, i32
  }
  func.func @transform_7(%arg0: i32) -> (i32, i32) {
    %c0_i32 = arith.constant 0 : i32
    %c0_i32_0 = arith.constant 0 : i32
    %c0_i32_1 = arith.constant 0 : i32
    return %c0_i32, %c0_i32_0 : i32, i32
  }
  func.func @transform_8(%arg0: i32) -> (i32, i32) {
    %c0_i32 = arith.constant 0 : i32
    %c0_i32_0 = arith.constant 0 : i32
    %c0_i32_1 = arith.constant 0 : i32
    return %c0_i32, %c0_i32_0 : i32, i32
  }
  func.func @transform_9(%arg0: i32) -> (i32, i32) {
    %c0_i32 = arith.constant 0 : i32
    %c0_i32_0 = arith.constant 0 : i32
    %c0_i32_1 = arith.constant 0 : i32
    return %c0_i32, %c0_i32_0 : i32, i32
  }
  func.func @transform_10(%arg0: i32) -> (i32, i32) {
    %c0_i32 = arith.constant 0 : i32
    %c0_i32_0 = arith.constant 0 : i32
    %c0_i32_1 = arith.constant 0 : i32
    return %c0_i32, %c0_i32_0 : i32, i32
  }
  func.func @transform_11(%arg0: i32) -> (i32, i32) {
    %c0_i32 = arith.constant 0 : i32
    %c0_i32_0 = arith.constant 0 : i32
    return %arg0, %c0_i32 : i32, i32
  }
}

</mosaic_0001>

<bundles_post_ra>
// kernel: tpu_custom_call.1
= control target key start
LH: loop header
LB: loop body
LE: loop exit
PB: predicated region body
PF: predicated region fallthrough
CT: control target
= control target key end

     0   :  { %16 = vsyncpa [#allocation3], 0  ;;  %s2300_s0 = inlined_call_operand.vmem [shape: f32[64,4], index: 0, kind: input, shape index: {}]   ;;  %s2301_s1 = inlined_call_operand.vmem [shape: f32[4,64], index: 1, kind: input, shape index: {}]   ;;  %s2302_s2 = inlined_call_operand.vmem [shape: f32[1,64], index: 2, kind: input, shape index: {}]   ;;  %s2303_s3 = inlined_call_operand.vmem [shape: f32[64,256], index: 3, kind: input, shape index: {}]   ;;  %s2304_s4 = inlined_call_operand.vmem [shape: f32[1,256], index: 4, kind: input, shape index: {}]   ;;  %s2305_s5 = inlined_call_operand.hbm [shape: f32[256,256], index: 5, kind: input, shape index: {}]   ;;  %s2306_s6 = inlined_call_operand.vmem [shape: f32[1,256], index: 6, kind: input, shape index: {}]   ;;  %s2307_s7 = inlined_call_operand.vmem [shape: f32[256,64], index: 7, kind: input, shape index: {}]   ;;  %s2308_s8 = inlined_call_operand.vmem [shape: f32[1,64], index: 8, kind: input, shape index: {}]   ;;  %s2309_s9 = inlined_call_operand.vmem [shape: f32[64,128], index: 9, kind: input, shape index: {}]   ;;  %s2310_s10 = inlined_call_operand.vmem [shape: f32[1,128], index: 10, kind: input, shape index: {}]   ;;  %s2311_s11 = inlined_call_operand.hbm [shape: f32[64,128], index: 11, kind: output, shape index: {}]  }
   0x1   :  { %17 = vsyncpa [#allocation4], 0 }
   0x2   :  { %19 = vsyncpa [#allocation4 + $0x1], 0  ;;  %s1857_s17 = smov 0   ;;  %s1859_s18 = smov 0  }
   0x3   :  { %s1861_s19 = smov 0   ;;  %s1863_s20 = smov 0  }
   0x4 LB: > { %s1878_s21 = sadd.s32 4294967295, %s1788_s20   ;;  %s1261_s22 = sadd.s32 4294967294, %s1788_s20   ;;  %s1788_s20 = sphi %s1863_s20, %s2329_s20   ;;  %s1784_s19 = sphi %s1861_s19, %s2328_s19   ;;  %s1780_s18 = sphi %s1859_s18, %s2327_s18   ;;  %s1776_s17 = sphi %s1857_s17, %s2326_s17  }
   0x5   : > { %s1882_s23 = sadd.s32 1, %s1788_s20   ;;  %s268_s24 = sadd.s32 1, %s1784_s19 }
   0x6   : > { %s265_s25 = ssub.s32 %s1788_s20, %s1882_s23  ;;  %p278_p0 = scmp.ne.s32.totalorder %s1784_s19, %s1780_s18 }
   0x7   : > { %p266_p1 = scmp.eq.s32.totalorder %s265_s25, 0  ;;  %p279_p2 = scmp.eq.s32.totalorder %s1878_s21, 1 }
   0x8   : > { %p284_p3 = scmp.ne.s32.totalorder %s1780_s18, %s1776_s17  ;;  %p285_p4 = scmp.eq.s32.totalorder %s1261_s22, 1 }
   0x9   : > { %s1893_s26 = scalar_select %p266_p1, %s1784_s19, %s268_s24  }
   0xa   : > { %p1895_p5 = por %p279_p2, %p278_p0  ;;  %p1899_p6 = por %p285_p4, %p284_p3 }
   0xb   : > { %2315 = sst [smem:[#allocation8_spill]] %s1893_s26  ;;  %p1262_p7 = scmp.ge.s32.totalorder %s1788_s20, 1 }
   0xc   : > { %s2316_s27 = scalar_select %p1895_p5, 1, 0 }
   0xd   : > { %s2317_s28 = scalar_select %p1899_p6, 1, 0 }
   0xe   : > { %p292_p8 = scmp.lt.s32.totalorder %s1788_s20, 3  ;;  %p2312_p9 = scmp.eq.s32.totalorder %s1878_s21, 0 }
   0xf   : > { %s1790_s30 = smov [#allocation2]   ;;  %s1694_s16 = scalar_lea.hbm %s2305_s5, 8192 }
  0x10   : > { %p1906_p10 = pnand %p1262_p7, %p292_p8  ;;  %s316_s12 = sshll.u32 %s1790_s30, 4  ;;  %s317_s12 = int_to_ptr.vmem [resolvable:$true] %s316_s12 }
  0x11   : > { %p1695_p13 = scmp.ne.s32.totalorder %s2305_s5, %s1694_s16  ;;  %p1701_p3 = scmp.lt.u32.totalorder %s1694_s16, %s2305_s5 }
  0x12   : > { %s2318_s29 = scalar_select %p1906_p10, 1, 0 }
  0x13   : > { %p1581_p11 = pneg %p1906_p10 }
  0x15   : > { %p1914_p12 = pnand %p2312_p9, %p1581_p11 }
  0x17   : > { %p1696_p0 = pneg %p1914_p12 }
  0x19   : > { %p1697_p1 = pnand %p1696_p0, %p1695_p13 }
  0x1b   : > { %p1698_p2 = pneg %p1697_p1 }
  0x1d   : > { %p1703_p4 = pnand %p1701_p3, %p1698_p2 }
  0x1f   : > { %1706 = shalt.err (!%p1703_p4)
}
  0x20   : > { %s1707_s26 = scalar_lea.vmem %s317_s12, 8192  ;;  %p1715_p9 = scmp.lt.s32.totalorder %s317_s12, %s317_s12 }
  0x21   : > { %p1708_p7 = scmp.ne.s32.totalorder %s317_s12, %s1707_s26  ;;  %p1716_p6 = scmp.lt.s32.totalorder %s1707_s26, %s1707_s26 }
  0x23   : > { %p1710_p8 = pnand %p1708_p7, %p1696_p0  ;;  %p1717_p5 = por %p1716_p6, %p1715_p9 }
  0x25   : > { %p1711_p11 = pneg %p1710_p8 }
  0x27   : > { %p1718_p10 = pnand %p1717_p5, %p1711_p11 }
  0x29   : > { %1721 = shalt.err (!%p1718_p10)
}
  0x2a   : > { %s1791_s14 = smov 256   ;;  %s1792_s15 = smov 16  }
  0x2b   : > { %1584 = dma.hbm_to_vmem [thread:$0]  (!%p1914_p12), %s2305_s5, 8192, %s317_s12, [#allocation3], %s1791_s14, %s1791_s14, %s1792_s15  }
  0x2c   : > { %p2320_p13 = scmp.ne.s32.totalorder %s2318_s29, 0 }
  0x2d   : > { %p2321_p1 = scmp.eq.s32.totalorder (!%p2320_p13), %s1878_s21, 0 }
  0x2e   : > { %356 = sbr.rel (%p2320_p13) target bundleno = 1439 (0x59f), region = 64 }
  0x35   : > { %1767 = dma.done.wait (%p2321_p1), [#allocation3], 8192   ;;  %p2322_p0 = pmov %p2321_p1 }
  0x36   : > { %s1268_s26 = sshll.u32 %s1878_s21, 2  ;;  %vm428_vm0 = vcmask 1043456   ;;  %vm415_vm1 = vcmask 31744   ;;  %v407_v0 = vld [vmem:[%s2301_s1] sm:$0xf]  ;;  %v522_v4 = vld [vmem:[%s2303_s3 + $0x8] sm:$0xff] }
  0x37   : > { %1769 = vsyncadd (%p2322_p0), [#allocation3], 4294959104  ;;  %p397_p5 = scmp.lt.s32.totalorder %s1268_s26, 7  ;;  %1353 = vmatprep.subr.msk.mxu1 %vm428_vm0, %v407_v0  ;;  %v524_v5 = vld [vmem:[%s2303_s3 + $0x18] sm:$0xff]  ;;  %v521_v8 = vld [vmem:[%s2303_s3] sm:$0xff]  ;;  %v1793_v28 = vmov 0.0  }
  0x38   : > { %1354 = vmatpush3.msk.msra.mxu1 %vm428_vm0, %v407_v0  ;;  %v1383_v6 = vpack.c.bf16 %v524_v5, %v522_v4  ;;  %v523_v9 = vld [vmem:[%s2303_s3 + $0x10] sm:$0xff]  ;;  %v526_v11 = vld [vmem:[%s2303_s3 + $0x28] sm:$0xff]  ;;  %v528_v12 = vld [vmem:[%s2303_s3 + $0x38] sm:$0xff]  ;;  %vm549_vm2 = vcmask 523264   ;;  %s393_s14 = sand.u32 1, %s1780_s18   ;;  %p2323_p9 = scmp.ne.s32.totalorder %s2316_s27, 0 }
  0x39   : > { %s2331_s26 = smov (!%p397_p5, %s1268_s26), 7  ;;  %v1385_v10 = vpack.c.bf16 %v523_v9, %v521_v8  ;;  %v1387_v13 = vpack.c.bf16 %v528_v12, %v526_v11  ;;  %v525_v14 = vld [vmem:[%s2303_s3 + $0x20] sm:$0xff]  ;;  %v527_v15 = vld [vmem:[%s2303_s3 + $0x30] sm:$0xff]  ;;  %v530_v17 = vld [vmem:[%s2303_s3 + $0x48] sm:$0xff]  ;;  %s1267_s15 = sshll.u32 %s393_s14, 5 }
  0x3a   : > { %s1269_s16 = sshll.u32 %s2331_s26, 3  ;;  %1384 = vmatprep.subr.bf16.mxu1 %v1383_v6  ;;  %v1389_v16 = vpack.c.bf16 %v527_v15, %v525_v14  ;;  %v532_v18 = vld [vmem:[%s2303_s3 + $0x58] sm:$0xff]  ;;  %v529_v20 = vld [vmem:[%s2303_s3 + $0x40] sm:$0xff]  ;;  %v531_v21 = vld [vmem:[%s2303_s3 + $0x50] sm:$0xff]  ;;  %s395_s24 = scalar_lea.vmem [#allocation5], %s1267_s15 }
  0x3b   : > { %s400_s12 = scalar_lea.vmem %s2300_s0, %s1269_s16  ;;  %v1391_v19 = vpack.c.bf16 %v532_v18, %v530_v17  ;;  %v1393_v22 = vpack.c.bf16 %v531_v21, %v529_v20  ;;  %v534_v23 = vld [vmem:[%s2303_s3 + $0x68] sm:$0xff]  ;;  %v536_v24 = vld [vmem:[%s2303_s3 + $0x78] sm:$0xff]  ;;  %v533_v25 = vld [vmem:[%s2303_s3 + $0x60] sm:$0xff]  ;;  %s1187_s26 = sshll.u32 %s395_s24, 4  ;;  %s2252_s26 = int_to_ptr.vmem [resolvable:$true] %s1187_s26 }
  0x3c   : > { %v403_v1 = vld [vmem:[%s400_s12] sm:$0xff]  ;;  %v404_v2 = vld [vmem:[%s400_s12 + $0x8] sm:$0xff]  ;;  %v405_v3 = vld [vmem:[%s400_s12 + $0x10] sm:$0xff]  ;;  %v1395_v26 = vpack.c.bf16 %v536_v24, %v534_v23  ;;  %s1291_s16 = sshll.u32 %s1878_s21, 9  ;;  %s2259_s29 = scalar_lea.sflag [#allocation4], %s393_s14 }
  0x3d   : > { %1355 = vmatprep.mubr.msk.f32.mxu1 %vm415_vm1, %v403_v1  ;;  %v406_v7 = vld [vmem:[%s400_s12 + $0x18] sm:$0xff]  ;;  %v535_v27 = vld [vmem:[%s2303_s3 + $0x70] sm:$0xff]  ;;  %v660_v30 = vld [vmem:[#allocation2 + $0x8] sm:$0xff]  ;;  %s2257_s30 = scalar_lea.hbm %s2311_s11, %s1291_s16  ;;  %s1722_s15 = scalar_lea.vmem %s2252_s26, 512 }
  0x3e   : > { %1356 = vmatmul.mubr.msk.f32.vlgmr.msra.gmra.mrb[0].mxu1 %vm415_vm1, %v404_v2  ;;  %v1397_v29 = vpack.c.bf16 %v535_v27, %v533_v25  ;;  %v662_v31 = vld [vmem:[#allocation2 + $0x18] sm:$0xff]  ;;  %v659_v32 = vld [vmem:[#allocation2] sm:$0xff]  ;;  %v661_v34 = vld [vmem:[#allocation2 + $0x10] sm:$0xff]  ;;  %p1723_p6 = scmp.ne.s32.totalorder %s2252_s26, %s1722_s15  ;;  %s1794_s21 = smov [#allocation5]  }
  0x3f   : > { %1358 = vmatprep.mubr.msk.f32.mxu1 %vm415_vm1, %v405_v3  ;;  %1386 = vmatpush1.bf16.msra.mxu1 %v1385_v10  ;;  %v1399_v33 = vpack.c.bf16 %v662_v31, %v660_v30  ;;  %v664_v35 = vld [vmem:[#allocation2 + $0x28] sm:$0xff]  ;;  %v666_v36 = vld [vmem:[#allocation2 + $0x38] sm:$0xff]  ;;  %v2000_v37 = vpack.c.bf16 %v661_v34, %v659_v32  ;;  %v663_v39 = vld [vmem:[#allocation2 + $0x20] sm:$0xff]  ;;  %s1726_s12 = sshll.u32 %s1794_s21, 4  ;;  %s1727_s12 = int_to_ptr.vmem [resolvable:$false] %s1726_s12 }
  0x40   : > { %1388 = vmatprep.subr.bf16.mxu1 %v1387_v13  ;;  %v2002_v38 = vpack.c.bf16 %v666_v36, %v664_v35  ;;  %v665_v40 = vld [vmem:[#allocation2 + $0x30] sm:$0xff]  ;;  %v668_v41 = vld [vmem:[#allocation2 + $0x48] sm:$0xff]  ;;  %v670_v42 = vld [vmem:[#allocation2 + $0x58] sm:$0xff]  ;;  %p1724_p10 = pnand %p1723_p6, %p2323_p9  ;;  %s1728_s22 = scalar_lea.vmem %s1727_s12, 1024 }
  0x41   : > { %1400 = vmatprep.subr.bf16.mxu0 %v1399_v33  ;;  %v2005_v43 = vpack.c.bf16 %v665_v40, %v663_v39  ;;  %v2008_v44 = vpack.c.bf16 %v670_v42, %v668_v41  ;;  %v667_v45 = vld [vmem:[#allocation2 + $0x40] sm:$0xff]  ;;  %v669_v46 = vld [vmem:[#allocation2 + $0x50] sm:$0xff]  ;;  %v672_v47 = vld [vmem:[#allocation2 + $0x68] sm:$0xff]  ;;  %p1729_p2 = scmp.lt.s32.totalorder %s2252_s26, %s1727_s12  ;;  %p1730_p3 = scmp.lt.s32.totalorder %s1728_s22, %s1722_s15 }
  0x42   : > { %1359 = vmatmul.mubr.msk.f32.gmra.mrb[2].mxu1 %vm415_vm1, %v406_v7  ;;  %1402 = vmatpush1.bf16.msra.mxu0 %v2000_v37  ;;  %v674_v48 = vld [vmem:[#allocation2 + $0x78] sm:$0xff]  ;;  %v2011_v49 = vpack.c.bf16 %v669_v46, %v667_v45  ;;  %v671_v51 = vld [vmem:[#allocation2 + $0x60] sm:$0xff]  ;;  %v673_v52 = vld [vmem:[#allocation2 + $0x70] sm:$0xff]  ;;  %p1725_p12 = pneg %p1724_p10 }
  0x43   : > { %1390 = vmatpush1.bf16.msra.mxu1 %v1389_v16  ;;  %626 = vmatprep.mubr.f32.mxu1 %v1793_v28  ;;  %v2014_v50 = vpack.c.bf16 %v674_v48, %v672_v47  ;;  %v676_v53 = vld [vmem:[#allocation2 + $0x88] sm:$0xff]  ;;  %v678_v54 = vld [vmem:[#allocation2 + $0x98] sm:$0xff]  ;;  %v2017_v55 = vpack.c.bf16 %v673_v52, %v671_v51  ;;  %v675_v57 = vld [vmem:[#allocation2 + $0x80] sm:$0xff]  ;;  %p1731_p4 = por %p1730_p3, %p1729_p2 }
  0x44   : > { %1392 = vmatprep.subr.bf16.mxu1 %v1391_v19  ;;  %1404 = vmatprep.subr.bf16.mxu0 %v2002_v38  ;;  %v2020_v56 = vpack.c.bf16 %v678_v54, %v676_v53  ;;  %v677_v58 = vld [vmem:[#allocation2 + $0x90] sm:$0xff]  ;;  %v680_v59 = vld [vmem:[#allocation2 + $0xa8] sm:$0xff]  ;;  %v682_v60 = vld [vmem:[#allocation2 + $0xb8] sm:$0xff] }
  0x45   : > { %v2023_v61 = vpack.c.bf16 %v677_v58, %v675_v57  ;;  %v2026_v62 = vpack.c.bf16 %v682_v60, %v680_v59  ;;  %v679_v63 = vld [vmem:[#allocation2 + $0xa0] sm:$0xff]  ;;  %v681_v0 = vld [vmem:[#allocation2 + $0xb0] sm:$0xff]  ;;  %v684_v1 = vld [vmem:[#allocation2 + $0xc8] sm:$0xff]  ;;  %p1732_p7 = pnand %p1731_p4, %p1725_p12 }
  0x46   : > { %1406 = vmatpush1.bf16.msra.mxu0 %v2005_v43  ;;  %v686_v2 = vld [vmem:[#allocation2 + $0xd8] sm:$0xff]  ;;  %v2029_v3 = vpack.c.bf16 %v681_v0, %v679_v63  ;;  %v683_v5 = vld [vmem:[#allocation2 + $0xc0] sm:$0xff]  ;;  %v685_v6 = vld [vmem:[#allocation2 + $0xd0] sm:$0xff] }
  0x47   : > { %1394 = vmatpush1.bf16.msra.mxu1 %v1393_v22  ;;  %1408 = vmatprep.subr.bf16.mxu0 %v2008_v44  ;;  %v2032_v4 = vpack.c.bf16 %v686_v2, %v684_v1  ;;  %v688_v7 = vld [vmem:[#allocation2 + $0xe8] sm:$0xff]  ;;  %v690_v8 = vld [vmem:[#allocation2 + $0xf8] sm:$0xff]  ;;  %v2035_v9 = vpack.c.bf16 %v685_v6, %v683_v5  ;;  %v687_v11 = vld [vmem:[#allocation2 + $0xe0] sm:$0xff] }
  0x48   : > { %1396 = vmatprep.subr.bf16.mxu1 %v1395_v26  ;;  %v2038_v10 = vpack.c.bf16 %v690_v8, %v688_v7  ;;  %v689_v12 = vld [vmem:[#allocation2 + $0xf0] sm:$0xff]  ;;  %v692_v13 = vld [vmem:[#allocation2 + $0x108] sm:$0xff]  ;;  %v694_v14 = vld [vmem:[#allocation2 + $0x118] sm:$0xff] }
  0x49   : > { %v2041_v15 = vpack.c.bf16 %v689_v12, %v687_v11  ;;  %v2044_v16 = vpack.c.bf16 %v694_v14, %v692_v13  ;;  %v691_v17 = vld [vmem:[#allocation2 + $0x100] sm:$0xff]  ;;  %v693_v18 = vld [vmem:[#allocation2 + $0x110] sm:$0xff]  ;;  %v696_v19 = vld [vmem:[#allocation2 + $0x128] sm:$0xff]  ;;  %v539_v11 = vlaneseq }
  0x4a   : > { %1410 = vmatpush1.bf16.msra.mxu0 %v2011_v49  ;;  %v698_v20 = vld [vmem:[#allocation2 + $0x138] sm:$0xff]  ;;  %v2047_v21 = vpack.c.bf16 %v693_v18, %v691_v17  ;;  %v695_v23 = vld [vmem:[#allocation2 + $0x120] sm:$0xff]  ;;  %v697_v24 = vld [vmem:[#allocation2 + $0x130] sm:$0xff] }
  0x4b   : > { %1398 = vmatpush1.bf16.msra.mxu1 %v1397_v29  ;;  %1412 = vmatprep.subr.bf16.mxu0 %v2014_v50  ;;  %v2050_v22 = vpack.c.bf16 %v698_v20, %v696_v19  ;;  %v700_v25 = vld [vmem:[#allocation2 + $0x148] sm:$0xff]  ;;  %v702_v26 = vld [vmem:[#allocation2 + $0x158] sm:$0xff]  ;;  %v1437_v27 = vpack.c.bf16 %v697_v24, %v695_v23  ;;  %v699_v30 = vld [vmem:[#allocation2 + $0x140] sm:$0xff]  ;;  %v2082_v12 = vshrl.u32 %v539_v11, 7 }
  0x4c   : > { %1464 = vmatprep.subr.bf16.mxu1 %v1399_v33  ;;  %v1439_v29 = vpack.c.bf16 %v702_v26, %v700_v25  ;;  %v701_v31 = vld [vmem:[#allocation2 + $0x150] sm:$0xff]  ;;  %v704_v32 = vld [vmem:[#allocation2 + $0x168] sm:$0xff]  ;;  %v706_v33 = vld [vmem:[#allocation2 + $0x178] sm:$0xff] }
  0x4d   : > { %v1441_v34 = vpack.c.bf16 %v701_v31, %v699_v30  ;;  %v1443_v35 = vpack.c.bf16 %v706_v33, %v704_v32  ;;  %v703_v36 = vld [vmem:[#allocation2 + $0x160] sm:$0xff]  ;;  %v705_v39 = vld [vmem:[#allocation2 + $0x170] sm:$0xff]  ;;  %v716_v63 = vld [vmem:[#allocation2 + $0x1c8] sm:$0xff]  ;;  %v541_v13 = vsub.s32 0, %v2082_v12 }
  0x4e   : > { %1414 = vmatpush1.bf16.msra.mxu0 %v2017_v55  ;;  %v1445_v40 = vpack.c.bf16 %v705_v39, %v703_v36  ;;  %v1270_v41 = vld [vmem:[%s2302_s2] ss:$0 sm:$0xff]  ;;  %v718_v0 = vld [vmem:[#allocation2 + $0x1d8] sm:$0xff]  ;;  %v720_v5 = vld [vmem:[#allocation2 + $0x1e8] sm:$0xff] }
  0x4f   : > { %1416 = vmatprep.subr.bf16.mxu0 %v2020_v56  ;;  %v711_v60 = vld [vmem:[#allocation2 + $0x1a0] sm:$0xff]  ;;  %v1455_v1 = vpack.c.bf16 %v718_v0, %v716_v63  ;;  %v722_v6 = vld [vmem:[#allocation2 + $0x1f8] sm:$0xff]  ;;  %v935_v63 = vld [vmem:[%s2307_s7 + $0x30] sm:$0xff] }
  0x50   : > { %v715_v2 = vld [vmem:[#allocation2 + $0x1c0] sm:$0xff]  ;;  %v1459_v7 = vpack.c.bf16 %v722_v6, %v720_v5  ;;  %v936_v0 = vld [vmem:[%s2307_s7 + $0x38] sm:$0xff] }
  0x51   : > { %v719_v8 = vld [vmem:[#allocation2 + $0x1e0] sm:$0xff] }
  0x52   : > { %1418 = vmatpush1.bf16.msra.mxu0 %v2023_v61  ;;  %v537_v14 = vld [vmem:[%s2304_s4] sm:$0x3] }
  0x53   : > { %1420 = vmatprep.subr.bf16.mxu0 %v2026_v62 }
  0x56   : > { %1422 = vmatpush1.bf16.msra.mxu0 %v2029_v3 }
  0x57   : > { %1424 = vmatprep.subr.bf16.mxu0 %v2032_v4 }
  0x5a   : > { %1426 = vmatpush1.bf16.msra.mxu0 %v2035_v9 }
  0x5b   : > { %1428 = vmatprep.subr.bf16.mxu0 %v2038_v10 }
  0x5e   : > { %1430 = vmatpush1.bf16.msra.mxu0 %v2041_v15 }
  0x5f   : > { %1432 = vmatprep.subr.bf16.mxu0 %v2044_v16 }
  0x62   : > { %1434 = vmatpush1.bf16.msra.mxu0 %v2047_v21 }
  0x63   : > { %1436 = vmatprep.subr.bf16.mxu0 %v2050_v22 }
  0x66   : > { %1438 = vmatpush1.bf16.msra.mxu0 %v1437_v27 }
  0x67   : > { %1440 = vmatprep.subr.bf16.mxu0 %v1439_v29 }
  0x6a   : > { %1442 = vmatpush1.bf16.msra.mxu0 %v1441_v34 }
  0x6b   : > { %1444 = vmatprep.subr.bf16.mxu0 %v1443_v35 }
  0x6e   : > { %1446 = vmatpush1.bf16.msra.mxu0 %v1445_v40 }
 0x111   : > { %v1357_v42 = vpop.f32.mrb[0].mxu1 }
 0x112   : > { %v498_v45 = vpop.f32.mrb[1].mxu1  ;;  %v504_v47 = vadd.f32 %v1357_v42, %v1270_v41 }
 0x113   : > { %v499_v46 = vadd.f32 %v1270_v41, %v498_v45 }
 0x115   : > { %1630 = vtanh.f32 %v499_v46  ;;  %v1360_v48 = vpop.f32.mrb[2].mxu1 }
 0x116   : > { %v508_v51 = vpop.f32.mrb[3].mxu1  ;;  %1632 = vtanh.f32 %v504_v47  ;;  %v514_v53 = vadd.f32 %v1360_v48, %v1270_v41  ;;  %v945_v47 = vld [vmem:[%s2307_s7 + $0x80] sm:$0xff]  ;;  %v946_v48 = vld [vmem:[%s2307_s7 + $0x88] sm:$0xff] }
 0x117   : > { %v509_v52 = vadd.f32 %v1270_v41, %v508_v51  ;;  %v929_v51 = vld [vmem:[%s2307_s7] sm:$0xff] }
 0x119   : > { %1634 = vtanh.f32 %v509_v52  ;;  %v1527_v52 = vpack.c.bf16 %v946_v48, %v945_v47  ;;  %v958_v47 = vld [vmem:[%s2307_s7 + $0xe8] sm:$0xff] }
 0x11a   : > { %1636 = vtanh.f32 %v514_v53  ;;  %v930_v53 = vld [vmem:[%s2307_s7 + $0x8] sm:$0xff] }
 0x11f   : > { %v1631_v54 = vpop.eup %1630 }
 0x120   : > { %1276 = vmatmul.mubr.msk.f32.vlgmr.msra.gmra.mrb[4].mxu1 %vm549_vm2, %v1631_v54  ;;  %v1633_v57 = vpop.eup %1632  ;;  %v947_v54 = vld [vmem:[%s2307_s7 + $0x90] sm:$0xff] }
 0x121   : > { %632 = vmatprep.mubr.f32.mxu1 %v1793_v28  ;;  %1466 = vmatpush1.bf16.msra.mxu1 %v2000_v37 }
 0x122   : > { %1468 = vmatprep.subr.bf16.mxu1 %v2002_v38  ;;  %v710_v38 = vld [vmem:[#allocation2 + $0x198] sm:$0xff] }
 0x123   : > { %v1635_v58 = vpop.eup %1634 }
 0x124   : > { %1277 = vmatmul.mubr.msk.f32.gmra.mrb[6].mxu1 %vm549_vm2, %v1633_v57  ;;  %v1637_v37 = vpop.eup %1636  ;;  %v948_v57 = vld [vmem:[%s2307_s7 + $0x98] sm:$0xff] }
 0x125   : > { %638 = vmatprep.mubr.f32.mxu1 %v1793_v28  ;;  %1470 = vmatpush1.bf16.msra.mxu1 %v2005_v43 }
 0x126   : > { %1472 = vmatprep.subr.bf16.mxu1 %v2008_v44  ;;  %v707_v44 = vld [vmem:[#allocation2 + $0x180] sm:$0xff] }
 0x128   : > { %1278 = vmatmul.mubr.msk.f32.gmra.mrb[8].mxu1 %vm549_vm2, %v1635_v58  ;;  %v1529_v58 = vpack.c.bf16 %v930_v53, %v929_v51  ;;  %v941_v51 = vld [vmem:[%s2307_s7 + $0x60] sm:$0xff] }
 0x129   : > { %644 = vmatprep.mubr.f32.mxu1 %v1793_v28  ;;  %1474 = vmatpush1.bf16.msra.mxu1 %v2011_v49  ;;  %v708_v28 = vld [vmem:[#allocation2 + $0x188] sm:$0xff]  ;;  %v709_v49 = vld [vmem:[#allocation2 + $0x190] sm:$0xff] }
 0x12a   : > { %1476 = vmatprep.subr.bf16.mxu1 %v2014_v50  ;;  %v1447_v43 = vpack.c.bf16 %v710_v38, %v708_v28  ;;  %v1449_v50 = vpack.c.bf16 %v709_v49, %v707_v44  ;;  %v931_v28 = vld [vmem:[%s2307_s7 + $0x10] sm:$0xff]  ;;  %v932_v38 = vld [vmem:[%s2307_s7 + $0x18] sm:$0xff]  ;;  %v950_v44 = vld [vmem:[%s2307_s7 + $0xa8] sm:$0xff] }
 0x12b   : > { %v1533_v49 = vpack.c.bf16 %v932_v38, %v931_v28  ;;  %v944_v28 = vld [vmem:[%s2307_s7 + $0x78] sm:$0xff] }
 0x12c   : > { %1279 = vmatmul.mubr.msk.f32.gmra.mrb[10].mxu1 %vm549_vm2, %v1637_v37  ;;  %1448 = vmatprep.subr.bf16.mxu0 %v1447_v43  ;;  %v1531_v37 = vpack.c.bf16 %v948_v57, %v947_v54  ;;  %v959_v54 = vld [vmem:[%s2307_s7 + $0xf0] sm:$0xff]  ;;  %v960_v57 = vld [vmem:[%s2307_s7 + $0xf8] sm:$0xff] }
 0x12d   : > { %1478 = vmatpush1.bf16.msra.mxu1 %v2017_v55  ;;  %1450 = vmatpush1.bf16.msra.mxu0 %v1449_v50  ;;  %v712_v55 = vld [vmem:[#allocation2 + $0x1a8] sm:$0xff] }
 0x12e   : > { %1480 = vmatprep.subr.bf16.mxu1 %v2020_v56  ;;  %v714_v56 = vld [vmem:[#allocation2 + $0x1b8] sm:$0xff] }
 0x12f   : > { %v1451_v59 = vpack.c.bf16 %v714_v56, %v712_v55  ;;  %v933_v55 = vld [vmem:[%s2307_s7 + $0x20] sm:$0xff]  ;;  %v934_v56 = vld [vmem:[%s2307_s7 + $0x28] sm:$0xff] }
 0x131   : > { %1482 = vmatpush1.bf16.msra.mxu1 %v2023_v61  ;;  %v713_v61 = vld [vmem:[#allocation2 + $0x1b0] sm:$0xff]  ;;  %1452 = vmatprep.subr.bf16.mxu0 %v1451_v59 }
 0x132   : > { %1484 = vmatprep.subr.bf16.mxu1 %v2026_v62  ;;  %v1453_v62 = vpack.c.bf16 %v713_v61, %v711_v60  ;;  %v952_v60 = vld [vmem:[%s2307_s7 + $0xb8] sm:$0xff]  ;;  %v1537_v61 = vpack.c.bf16 %v934_v56, %v933_v55 }
 0x134   : > { %1454 = vmatpush1.bf16.msra.mxu0 %v1453_v62 }
 0x135   : > { %1486 = vmatpush1.bf16.msra.mxu1 %v2029_v3  ;;  %v717_v3 = vld [vmem:[#allocation2 + $0x1d0] sm:$0xff]  ;;  %1456 = vmatprep.subr.bf16.mxu0 %v1455_v1 }
 0x136   : > { %1488 = vmatprep.subr.bf16.mxu1 %v2032_v4  ;;  %v1457_v4 = vpack.c.bf16 %v717_v3, %v715_v2  ;;  %v723_v2 = vld [vmem:[%s2306_s6] sm:$0x3] }
 0x137   : > { %v2146_v3 = vrot.slane %v723_v2, %v541_v13 }
 0x138   : > { %1458 = vmatpush1.bf16.msra.mxu0 %v1457_v4 }
 0x139   : > { %1490 = vmatpush1.bf16.msra.mxu1 %v2035_v9  ;;  %v721_v9 = vld [vmem:[#allocation2 + $0x1f0] sm:$0xff]  ;;  %1460 = vmatprep.subr.bf16.mxu0 %v1459_v7 }
 0x13a   : > { %1492 = vmatprep.subr.bf16.mxu1 %v2038_v10  ;;  %v1461_v10 = vpack.c.bf16 %v721_v9, %v719_v8 }
 0x13c   : > { %1462 = vmatpush1.bf16.msra.mxu0 %v1461_v10 }
 0x13d   : > { %1494 = vmatpush1.bf16.msra.mxu1 %v2041_v15  ;;  %v545_v15 = vsub.s32 1, %v2082_v12  ;;  %1528 = vmatprep.subr.bf16.mxu0 %v1527_v52  ;;  %v942_v52 = vld [vmem:[%s2307_s7 + $0x68] sm:$0xff] }
 0x13e   : > { %1496 = vmatprep.subr.bf16.mxu1 %v2044_v16  ;;  %v542_v16 = vrot.slane %v537_v14, %v541_v13  ;;  %v1553_v53 = vpack.c.bf16 %v942_v52, %v941_v51 }
 0x13f   : > { %v546_v17 = vrot.slane %v537_v14, %v545_v15 }
 0x141   : > { %1498 = vmatpush1.bf16.msra.mxu1 %v2047_v21 }
 0x142   : > { %1500 = vmatprep.subr.bf16.mxu1 %v2050_v22 }
 0x145   : > { %1502 = vmatpush1.bf16.msra.mxu1 %v1437_v27 }
 0x146   : > { %1504 = vmatprep.subr.bf16.mxu1 %v1439_v29 }
 0x149   : > { %1506 = vmatpush1.bf16.msra.mxu1 %v1441_v34 }
 0x14a   : > { %1508 = vmatprep.subr.bf16.mxu1 %v1443_v35 }
 0x14d   : > { %1510 = vmatpush1.bf16.msra.mxu1 %v1445_v40 }
 0x14e   : > { %1512 = vmatprep.subr.bf16.mxu1 %v1447_v43  ;;  %v949_v43 = vld [vmem:[%s2307_s7 + $0xa0] sm:$0xff] }
 0x151   : > { %1514 = vmatpush1.bf16.msra.mxu1 %v1449_v50  ;;  %v1535_v50 = vpack.c.bf16 %v950_v44, %v949_v43 }
 0x152   : > { %1516 = vmatprep.subr.bf16.mxu1 %v1451_v59  ;;  %v951_v59 = vld [vmem:[%s2307_s7 + $0xb0] sm:$0xff] }
 0x155   : > { %1518 = vmatpush1.bf16.msra.mxu1 %v1453_v62  ;;  %v1539_v62 = vpack.c.bf16 %v952_v60, %v951_v59 }
 0x156   : > { %1520 = vmatprep.subr.bf16.mxu1 %v1455_v1  ;;  %v1541_v1 = vpack.c.bf16 %v936_v0, %v935_v63 }
 0x159   : > { %1522 = vmatpush1.bf16.msra.mxu1 %v1457_v4  ;;  %v2150_v4 = vrot.slane %v723_v2, %v545_v15 }
 0x15a   : > { %1524 = vmatprep.subr.bf16.mxu1 %v1459_v7 }
 0x15d   : > { %1526 = vmatpush1.bf16.msra.mxu1 %v1461_v10 }
 0x1f3   : > { %v628_v18 = vpop.f32.mrb[4].mxu1 }
 0x1f4   : > { %v629_v19 = vadd.f32 %v628_v18, %v542_v16  ;;  %v630_v20 = vpop.f32.mrb[5].mxu1 }
 0x1f5   : > { %v631_v21 = vadd.f32 %v630_v20, %v546_v17 }
 0x1f7   : > { %1638 = vtanh.f32 %v631_v21  ;;  %v634_v22 = vpop.f32.mrb[6].mxu1 }
 0x1f8   : > { %1640 = vtanh.f32 %v629_v19  ;;  %v635_v23 = vadd.f32 %v634_v22, %v542_v16  ;;  %v636_v24 = vpop.f32.mrb[7].mxu1 }
 0x1f9   : > { %v637_v25 = vadd.f32 %v636_v24, %v546_v17 }
 0x1fb   : > { %1642 = vtanh.f32 %v637_v25  ;;  %v640_v26 = vpop.f32.mrb[8].mxu1 }
 0x1fc   : > { %1644 = vtanh.f32 %v635_v23  ;;  %v641_v27 = vadd.f32 %v640_v26, %v542_v16  ;;  %v642_v29 = vpop.f32.mrb[9].mxu1 }
 0x1fd   : > { %v643_v30 = vadd.f32 %v642_v29, %v546_v17 }
 0x1ff   : > { %1646 = vtanh.f32 %v643_v30  ;;  %v646_v31 = vpop.f32.mrb[10].mxu1  ;;  %v953_v30 = vld [vmem:[%s2307_s7 + $0xc0] sm:$0xff] }
 0x200   : > { %1648 = vtanh.f32 %v641_v27  ;;  %v647_v32 = vadd.f32 %v646_v31, %v542_v16  ;;  %v648_v33 = vpop.f32.mrb[11].mxu1  ;;  %v954_v31 = vld [vmem:[%s2307_s7 + $0xc8] sm:$0xff] }
 0x201   : > { %v1639_v34 = vpop.eup %1638  ;;  %v649_v35 = vadd.f32 %v648_v33, %v546_v17  ;;  %v937_v33 = vld [vmem:[%s2307_s7 + $0x40] sm:$0xff] }
 0x202   : > { %v1641_v36 = vpop.eup %1640  ;;  %799 = vmatprep.mubr.f32.mxu0 %v1639_v34  ;;  %v938_v34 = vld [vmem:[%s2307_s7 + $0x48] sm:$0xff] }
 0x203   : > { %1650 = vtanh.f32 %v649_v35  ;;  %800 = vmatmul.mubr.f32.vlgmr.msra.gmra.mrb[0].mxu0 %v1641_v36  ;;  %v1545_v35 = vpack.c.bf16 %v938_v34, %v937_v33  ;;  %v955_v36 = vld [vmem:[%s2307_s7 + $0xd0] sm:$0xff] }
 0x204   : > { %1652 = vtanh.f32 %v647_v32  ;;  %1530 = vmatpush3.bf16.msra.mxu0 %v1529_v58  ;;  %v1543_v32 = vpack.c.bf16 %v954_v31, %v953_v30  ;;  %v1555_v58 = vpack.c.bf16 %v960_v57, %v959_v54 }
 0x205   : > { %v1643_v39 = vpop.eup %1642  ;;  %1532 = vmatprep.subr.bf16.mxu0 %v1531_v37  ;;  %v943_v37 = vld [vmem:[%s2307_s7 + $0x70] sm:$0xff] }
 0x206   : > { %v1645_v40 = vpop.eup %1644  ;;  %805 = vmatprep.mubr.f32.mxu0 %v1643_v39  ;;  %v956_v39 = vld [vmem:[%s2307_s7 + $0xd8] sm:$0xff]  ;;  %v1557_v38 = vpack.c.bf16 %v944_v28, %v943_v37 }
 0x207   : > { %806 = vmatmul.mubr.f32.gmra.mrb[2].mxu0 %v1645_v40  ;;  %v1547_v40 = vpack.c.bf16 %v956_v39, %v955_v36 }
 0x208   : > { %1534 = vmatpush3.bf16.msra.mxu0 %v1533_v49 }
 0x209   : > { %v1647_v41 = vpop.eup %1646  ;;  %1536 = vmatprep.subr.bf16.mxu0 %v1535_v50 }
 0x20a   : > { %v1649_v42 = vpop.eup %1648  ;;  %811 = vmatprep.mubr.f32.mxu0 %v1647_v41  ;;  %v939_v41 = vld [vmem:[%s2307_s7 + $0x50] sm:$0xff] }
 0x20b   : > { %812 = vmatmul.mubr.f32.gmra.mrb[4].mxu0 %v1649_v42  ;;  %v940_v42 = vld [vmem:[%s2307_s7 + $0x58] sm:$0xff] }
 0x20c   : > { %1538 = vmatpush3.bf16.msra.mxu0 %v1537_v61 }
 0x20d   : > { %v1651_v45 = vpop.eup %1650  ;;  %1540 = vmatprep.subr.bf16.mxu0 %v1539_v62 }
 0x20e   : > { %v1653_v46 = vpop.eup %1652  ;;  %817 = vmatprep.mubr.f32.mxu0 %v1651_v45  ;;  %v1549_v45 = vpack.c.bf16 %v940_v42, %v939_v41 }
 0x20f   : > { %818 = vmatmul.mubr.f32.gmra.mrb[6].mxu0 %v1653_v46  ;;  %v957_v46 = vld [vmem:[%s2307_s7 + $0xe0] sm:$0xff] }
 0x210   : > { %1542 = vmatpush3.bf16.msra.mxu0 %v1541_v1  ;;  %v1551_v48 = vpack.c.bf16 %v958_v47, %v957_v46 }
 0x211   : > { %1544 = vmatprep.subr.bf16.mxu0 %v1543_v32 }
 0x214   : > { %1546 = vmatpush3.bf16.msra.mxu0 %v1545_v35 }
 0x215   : > { %1548 = vmatprep.subr.bf16.mxu0 %v1547_v40 }
 0x218   : > { %1550 = vmatpush3.bf16.msra.mxu0 %v1549_v45 }
 0x219   : > { %1552 = vmatprep.subr.bf16.mxu0 %v1551_v48 }
 0x21c   : > { %1554 = vmatpush3.bf16.msra.mxu0 %v1553_v53  ;;  %v1281_v53 = vld [vmem:[%s2310_s10] ss:$0 sm:$0xff] }
 0x21d   : > { %1556 = vmatprep.subr.bf16.mxu0 %v1555_v58 }
 0x220   : > { %1558 = vmatpush3.bf16.msra.mxu0 %v1557_v38 }
 0x2d6   : > { %v801_v5 = vpop.f32.mrb[0].mxu0 }
 0x2d7   : > { %v802_v6 = vadd.f32 %v801_v5, %v2146_v3  ;;  %v803_v7 = vpop.f32.mrb[1].mxu0 }
 0x2d8   : > { %v804_v8 = vadd.f32 %v803_v7, %v2150_v4 }
 0x2da   : > { %1654 = vtanh.f32 %v804_v8  ;;  %v807_v9 = vpop.f32.mrb[2].mxu0 }
 0x2db   : > { %1656 = vtanh.f32 %v802_v6  ;;  %v808_v10 = vadd.f32 %v807_v9, %v2146_v3  ;;  %v809_v11 = vpop.f32.mrb[3].mxu0 }
 0x2dc   : > { %v810_v14 = vadd.f32 %v809_v11, %v2150_v4 }
 0x2de   : > { %1658 = vtanh.f32 %v810_v14  ;;  %v813_v13 = vpop.f32.mrb[4].mxu0 }
 0x2df   : > { %1660 = vtanh.f32 %v808_v10  ;;  %v814_v12 = vadd.f32 %v813_v13, %v2146_v3  ;;  %v815_v15 = vpop.f32.mrb[5].mxu0 }
 0x2e0   : > { %v816_v16 = vadd.f32 %v815_v15, %v2150_v4 }
 0x2e2   : > { %1662 = vtanh.f32 %v816_v16  ;;  %v819_v17 = vpop.f32.mrb[6].mxu0  ;;  %v1059_v16 = vld [vmem:[%s2309_s9 + $0x10] sm:$0xff] }
 0x2e3   : > { %1664 = vtanh.f32 %v814_v12  ;;  %v820_v18 = vadd.f32 %v819_v17, %v2146_v3  ;;  %v821_v19 = vpop.f32.mrb[7].mxu0  ;;  %v1060_v17 = vld [vmem:[%s2309_s9 + $0x18] sm:$0xff] }
 0x2e4   : > { %v1655_v20 = vpop.eup %1654  ;;  %v822_v21 = vadd.f32 %v821_v19, %v2150_v4  ;;  %v1061_v19 = vld [vmem:[%s2309_s9 + $0x20] sm:$0xff] }
 0x2e5   : > { %v1657_v22 = vpop.eup %1656  ;;  %896 = vmatprep.mubr.f32.mxu1 %v1655_v20  ;;  %v1062_v20 = vld [vmem:[%s2309_s9 + $0x28] sm:$0xff] }
 0x2e6   : > { %1666 = vtanh.f32 %v822_v21  ;;  %897 = vmatmul.mubr.f32.vlgmr.msra.gmra.mrb[12].mxu1 %v1657_v22  ;;  %v1567_v21 = vpack.c.bf16 %v1062_v20, %v1061_v19  ;;  %v1063_v22 = vld [vmem:[%s2309_s9 + $0x30] sm:$0xff] }
 0x2e7   : > { %1668 = vtanh.f32 %v820_v18  ;;  %v1563_v18 = vpack.c.bf16 %v1060_v17, %v1059_v16 }
 0x2e8   : > { %v1659_v23 = vpop.eup %1658 }
 0x2e9   : > { %v1661_v24 = vpop.eup %1660  ;;  %902 = vmatprep.mubr.f32.mxu1 %v1659_v23  ;;  %v1064_v23 = vld [vmem:[%s2309_s9 + $0x38] sm:$0xff] }
 0x2ea   : > { %903 = vmatmul.mubr.f32.gmra.mrb[14].mxu1 %v1661_v24  ;;  %v1571_v24 = vpack.c.bf16 %v1064_v23, %v1063_v22 }
 0x2ec   : > { %v1663_v25 = vpop.eup %1662 }
 0x2ed   : > { %v1665_v26 = vpop.eup %1664  ;;  %908 = vmatprep.mubr.f32.mxu1 %v1663_v25 }
 0x2ee   : > { %909 = vmatmul.mubr.f32.gmra.mrb[16].mxu1 %v1665_v26  ;;  %v1280_v26 = vld [vmem:[%s2308_s8] ss:$0 sm:$0xff] }
 0x2f0   : > { %v1667_v27 = vpop.eup %1666 }
 0x2f1   : > { %v1669_v29 = vpop.eup %1668  ;;  %914 = vmatprep.mubr.f32.mxu1 %v1667_v27 }
 0x2f2   : > { %915 = vmatmul.mubr.f32.gmra.mrb[18].mxu1 %v1669_v29 }
 0x3b9   : > { %v898_v43 = vpop.f32.mrb[12].mxu1 }
 0x3ba   : > { %v899_v44 = vadd.f32 %v898_v43, %v2146_v3  ;;  %v900_v49 = vpop.f32.mrb[13].mxu1 }
 0x3bb   : > { %v901_v50 = vadd.f32 %v900_v49, %v2150_v4 }
 0x3bd   : > { %1670 = vtanh.f32 %v901_v50  ;;  %v904_v55 = vpop.f32.mrb[14].mxu1 }
 0x3be   : > { %1672 = vtanh.f32 %v899_v44  ;;  %v905_v56 = vadd.f32 %v904_v55, %v2146_v3  ;;  %v906_v59 = vpop.f32.mrb[15].mxu1 }
 0x3bf   : > { %v907_v60 = vadd.f32 %v906_v59, %v2150_v4 }
 0x3c1   : > { %1674 = vtanh.f32 %v907_v60  ;;  %v910_v61 = vpop.f32.mrb[16].mxu1 }
 0x3c2   : > { %1676 = vtanh.f32 %v905_v56  ;;  %v911_v62 = vadd.f32 %v910_v61, %v2146_v3  ;;  %v912_v63 = vpop.f32.mrb[17].mxu1 }
 0x3c3   : > { %v913_v0 = vadd.f32 %v912_v63, %v2150_v4 }
 0x3c5   : > { %1678 = vtanh.f32 %v913_v0  ;;  %v916_v1 = vpop.f32.mrb[18].mxu1 }
 0x3c6   : > { %1680 = vtanh.f32 %v911_v62  ;;  %v917_v2 = vadd.f32 %v916_v1, %v2146_v3  ;;  %v918_v5 = vpop.f32.mrb[19].mxu1  ;;  %v1057_v3 = vld [vmem:[%s2309_s9] sm:$0xff] }
 0x3c7   : > { %v1671_v6 = vpop.eup %1670  ;;  %v919_v7 = vadd.f32 %v918_v5, %v2150_v4  ;;  %v1058_v4 = vld [vmem:[%s2309_s9 + $0x8] sm:$0xff] }
 0x3c8   : > { %v1673_v8 = vpop.eup %1672  ;;  %1032 = vmatprep.mubr.f32.mxu0 %v1671_v6  ;;  %v1559_v15 = vpack.c.bf16 %v1058_v4, %v1057_v3 }
 0x3c9   : > { %1682 = vtanh.f32 %v919_v7  ;;  %1033 = vmatmul.mubr.f32.vlgmr.msra.gmra.mrb[8].mxu0 %v1673_v8 }
 0x3ca   : > { %1684 = vtanh.f32 %v917_v2  ;;  %1560 = vmatprep.subr.bf16.mxu1 %v1559_v15 }
 0x3cb   : > { %v1675_v9 = vpop.eup %1674  ;;  %1562 = vmatpush3.bf16.msra.mxu1 %v1559_v15 }
 0x3cc   : > { %v1677_v10 = vpop.eup %1676  ;;  %1037 = vmatprep.mubr.f32.mxu0 %v1675_v9  ;;  %1564 = vmatprep.subr.bf16.mxu1 %v1563_v18 }
 0x3cd   : > { %1038 = vmatmul.mubr.f32.gmra.mrb[10].mxu0 %v1677_v10 }
 0x3cf   : > { %v1679_v11 = vpop.eup %1678  ;;  %1566 = vmatpush3.bf16.msra.mxu1 %v1563_v18 }
 0x3d0   : > { %v1681_v14 = vpop.eup %1680  ;;  %1042 = vmatprep.mubr.f32.mxu0 %v1679_v11  ;;  %1568 = vmatprep.subr.bf16.mxu1 %v1567_v21 }
 0x3d1   : > { %1043 = vmatmul.mubr.f32.gmra.mrb[12].mxu0 %v1681_v14 }
 0x3d3   : > { %v1683_v13 = vpop.eup %1682  ;;  %1570 = vmatpush3.bf16.msra.mxu1 %v1567_v21 }
 0x3d4   : > { %v1685_v12 = vpop.eup %1684  ;;  %1047 = vmatprep.mubr.f32.mxu0 %v1683_v13  ;;  %1572 = vmatprep.subr.bf16.mxu1 %v1571_v24 }
 0x3d5   : > { %1048 = vmatmul.mubr.f32.gmra.mrb[14].mxu0 %v1685_v12 }
 0x3d7   : > { %1574 = vmatpush3.bf16.msra.mxu1 %v1571_v24 }
 0x49c   : > { %v1329_v25 = vpop.f32.mrb[8].mxu0 }
 0x49d   : > { %v1330_v27 = vpop.f32.mrb[9].mxu0 }
 0x49e   : > { %v1331_v29 = vadd.f32 %v1330_v27, %v1329_v25 }
 0x4a0   : > { %v1035_v30 = vadd.f32 %v1331_v29, %v1280_v26  ;;  %v1332_v31 = vpop.f32.mrb[10].mxu0 }
 0x4a1   : > { %v1333_v32 = vpop.f32.mrb[11].mxu0 }
 0x4a2   : > { %1686 = vtanh.f32 %v1035_v30  ;;  %v1334_v33 = vadd.f32 %v1333_v32, %v1332_v31 }
 0x4a4   : > { %v1040_v34 = vadd.f32 %v1334_v33, %v1280_v26  ;;  %v1335_v35 = vpop.f32.mrb[12].mxu0 }
 0x4a5   : > { %v1336_v36 = vpop.f32.mrb[13].mxu0 }
 0x4a6   : > { %1688 = vtanh.f32 %v1040_v34  ;;  %v1337_v39 = vadd.f32 %v1336_v36, %v1335_v35 }
 0x4a8   : > { %v1045_v40 = vadd.f32 %v1337_v39, %v1280_v26  ;;  %v1338_v41 = vpop.f32.mrb[14].mxu0 }
 0x4a9   : > { %v1339_v42 = vpop.f32.mrb[15].mxu0 }
 0x4aa   : > { %1690 = vtanh.f32 %v1045_v40  ;;  %v1340_v45 = vadd.f32 %v1339_v42, %v1338_v41 }
 0x4ac   : > { %v1687_v46 = vpop.eup %1686  ;;  %v1050_v47 = vadd.f32 %v1340_v45, %v1280_v26 }
 0x4ad   : > { %1377 = vmatprep.mubr.msk.f32.mxu1 %vm549_vm2, %v1687_v46 }
 0x4ae   : > { %1692 = vtanh.f32 %v1050_v47 }
 0x4b0   : > { %v1689_v48 = vpop.eup %1688 }
 0x4b1   : > { %1378 = vmatmul.mubr.msk.f32.vlgmr.msra.gmra.mrb[20].mxu1 %vm549_vm2, %v1689_v48 }
 0x4b4   : > { %v1691_v51 = vpop.eup %1690 }
 0x4b5   : > { %1380 = vmatprep.mubr.msk.f32.mxu1 %vm549_vm2, %v1691_v51 }
 0x4b8   : > { %v1693_v52 = vpop.eup %1692 }
 0x4b9   : > { %1381 = vmatmul.mubr.msk.f32.gmra.mrb[22].mxu1 %vm549_vm2, %v1693_v52 }
 0x584   : > { %v1379_v54 = vpop.f32.mrb[20].mxu1 }
 0x585   : > { %v1156_v57 = vadd.f32 %v1379_v54, %v1281_v53  ;;  %v1150_v58 = vpop.f32.mrb[21].mxu1 }
 0x586   : > { %v1151_v37 = vadd.f32 %v1281_v53, %v1150_v58 }
 0x587   : > { %1170 = vst [vmem:[%s395_s24 + $0x8] sm:$0xff] %v1156_v57 }
 0x588   : > { %1169 = vst [vmem:[%s395_s24] sm:$0xff] %v1151_v37 }
 0x58c   : > { %v1382_v28 = vpop.f32.mrb[22].mxu1 }
 0x58d   : > { %v1166_v38 = vadd.f32 %v1382_v28, %v1281_v53  ;;  %v1160_v43 = vpop.f32.mrb[23].mxu1 }
 0x58e   : > { %v1161_v44 = vadd.f32 %v1281_v53, %v1160_v43 }
 0x58f   : > { %1172 = vst [vmem:[%s395_s24 + $0x18] sm:$0xff] %v1166_v38 }
 0x590   : > { %1171 = vst [vmem:[%s395_s24 + $0x10] sm:$0xff] %v1161_v44 }
 0x591   : > { %1735 = shalt.err (!%p1732_p7)
}
 0x592   : > { %s1736_s14 = scalar_lea.hbm %s2257_s30, 512  ;;  %s1740_s13 = scalar_lea.hbm %s2311_s11, 1024 }
 0x593   : > { %p1737_p8 = scmp.ne.s32.totalorder %s2257_s30, %s1736_s14  ;;  %p1741_p1 = scmp.lt.u32.totalorder %s2257_s30, %s2311_s11 }
 0x594   : > { %p1742_p0 = scmp.lt.u32.totalorder %s1740_s13, %s1736_s14  ;;  %p1744_p6 = scmp.lt.u32.totalorder %s1736_s14, %s2257_s30 }
 0x595   : > { %p1738_p11 = pnand %p1737_p8, %p2323_p9 }
 0x596   : > { %p1743_p5 = por %p1742_p0, %p1741_p1 }
 0x597   : > { %p1739_p13 = pneg %p1738_p11 }
 0x598   : > { %p1745_p10 = por %p1744_p6, %p1743_p5 }
 0x59a   : > { %p1746_p12 = pnand %p1745_p10, %p1739_p13 }
 0x59c   : > { %1749 = shalt.err (!%p1746_p12)
}
 0x59d   : > { %s1795_s15 = smov 128   ;;  %s1796_s12 = smov 8  }
 0x59e   : > { %1579 = dma.vmem_to_hbm [thread:$0]  (%p2323_p9), %s2252_s26, 512, %s2257_s30, %s2259_s29, %s1795_s15, %s1795_s15, %s1796_s12  }
 0x59f PF: > { %p1591_p2 = scmp.ge.s32.totalorder %s1788_s20, 2  ;;  %s1202_s22 = sand.u32 1, %s1776_s17  }
 0x5a0   : > { %p2324_p3 = scmp.ne.s32.totalorder %s2317_s28, 0  ;;  %s1203_s14 = scalar_lea.sflag [#allocation4], %s1202_s22 }
 0x5a2   : > { %p1586_p4 = pnand %p1591_p2, %p2324_p3 }
 0x5a4   : > { %1771 = dma.done.wait (!%p1586_p4), %s1203_s14, 512  }
 0x5a5   : > { %1773 = vsyncadd (!%p1586_p4), %s1203_s14, 4294966784  ;;  %s2325_s24 = sld [smem:[#allocation8_spill]]  ;;  %p22_p7 = scmp.ge.s32.totalorder %s1882_s23, 4  }
 0x5a6   : > { %s2326_s17 = smov %s1780_s18  ;;  %s2327_s18 = smov %s1784_s19 }
 0x5a7   : > { %s2329_s20 = smov %s1882_s23  ;;  %24 = sbr.rel (!%p22_p7) target bundleno = 4 (0x4), region = 104 }
 0x5ab   : > { %s2328_s19 = smov %s2325_s24 }
 0x5ae   :  { %1208 = vsyncpa [#allocation3], 1 }
 0x5af   :  { %1210 = vsyncpa [#allocation3 + $0x1], 1 }
 0x5b0   :  { %1211 = vsyncpa [#allocation4], 1 }
 0x5b1   :  { %1213 = vsyncpa [#allocation4 + $0x1], 1 }

</bundles_post_ra>
